<compile_context>
chip_gen: v7x
topology: tpu7x:2x2x1
jax: 0.10.0
libtpu: 0.0.40
codegen_flags: <defaults>
</compile_context>

<pallas_src>
import jax
import jax.numpy as jnp
from jax import lax
from jax.experimental import pallas as pl
from jax.experimental.pallas import tpu as pltpu

DOWNSAMPLE_FACTOR = 32
BN_EPS = 1e-5


def _bottleneck_kernel(x_ref, w_ref, gamma_ref, beta_ref, o_ref):
    # x_ref:     [B, D]   flattened activations (native dtype)
    # w_ref:     [D, L]   linear weight, pre-transposed at parameter-load time
    # gamma_ref: [1, L]   BN weight
    # beta_ref:  [1, L]   BN bias
    # o_ref:     [B, L]   output
    #
    # Linear (bias omitted: a per-column constant is cancelled exactly by the BN mean
    # subtraction below). Native dtypes go straight to the MXU; accumulate in f32.
    y = jnp.dot(x_ref[...], w_ref[...], preferred_element_type=jnp.float32)   # [B, L]

    # BatchNorm1d (training mode: batch mean, biased variance), all in f32 vregs.
    mean = jnp.mean(y, axis=0, keepdims=True)                    # [1, L]
    centered = y - mean                                          # [B, L]
    var = jnp.mean(centered * centered, axis=0, keepdims=True)   # [1, L]

    # Fold gamma into the normalization scale: one [1, L] multiply instead of an
    # extra full-width [B, L] multiply. Then fused affine + ReLU, cast only at store.
    scale = gamma_ref[...].astype(jnp.float32) * lax.rsqrt(var + BN_EPS)      # [1, L]
    out = jnp.maximum(centered * scale + beta_ref[...].astype(jnp.float32), 0.0)
    o_ref[...] = out.astype(o_ref.dtype)


def prepare_bottleneck_params(w, b, gamma, beta):
    """Run ONCE at parameter-load time (not per forward call).

    w: [L, D] PyTorch nn.Linear layout; b: [L] (unused -- cancelled by BatchNorm);
    gamma, beta: [L] BatchNorm affine parameters.
    """
    L = w.shape[0]
    del b  # mathematically cancelled by the BN mean subtraction
    return {
        "w_t": jnp.asarray(w).T,                     # [D, L] so the kernel does x @ w_t
        "gamma": jnp.asarray(gamma).reshape(1, L),
        "beta": jnp.asarray(beta).reshape(1, L),
    }


def erfnet_bottleneck_forward(x_nchw, params):
    """x_nchw: [B, C, H, W]; params: output of prepare_bottleneck_params."""
    B = x_nchw.shape[0]
    D = x_nchw.shape[1] * x_nchw.shape[2] * x_nchw.shape[3]
    L = params["w_t"].shape[1]

    x_flat = x_nchw.reshape(B, D)            # == torch.nn.Flatten() on NCHW

    x_bytes = jnp.dtype(x_nchw.dtype).itemsize
    w_bytes = jnp.dtype(params["w_t"].dtype).itemsize
    cost = pl.CostEstimate(
        flops=2 * B * D * L,
        transcendentals=0,
        bytes_accessed=(B * D + B * L) * x_bytes + (D * L + 2 * L) * w_bytes,
    )

    vmem = pl.BlockSpec(memory_space=pltpu.MemorySpace.VMEM)
    return pl.pallas_call(
        _bottleneck_kernel,
        out_shape=jax.ShapeDtypeStruct((B, L), x_nchw.dtype),
        in_specs=[vmem, vmem, vmem, vmem],
        out_specs=vmem,
        cost_estimate=cost,
    )(x_flat, params["w_t"], params["gamma"], params["beta"])


def _reference(x_nchw, w, b, gamma, beta):
    # Faithful PyTorch-forward reference: Flatten -> Linear(+bias) -> BN1d(train) -> ReLU.
    B = x_nchw.shape[0]
    x_flat = x_nchw.reshape(B, -1).astype(jnp.float32)
    y = x_flat @ w.T.astype(jnp.float32) + b
    mean = jnp.mean(y, axis=0, keepdims=True)
    var = jnp.mean((y - mean) ** 2, axis=0, keepdims=True)
    y_hat = (y - mean) / jnp.sqrt(var + BN_EPS)
    return jnp.maximum(y_hat * gamma + beta, 0.0)


if __name__ == "__main__":
    # Module config: input_res=(128, 128) -> bottleneck res = 4x4 (downsample factor 32),
    # bottleneck_channels=[8], latent_size=32, flatten_bottleneck=True, compress=False.
    input_res = (128, 128)
    bottleneck_h = input_res[0] // DOWNSAMPLE_FACTOR   # 4
    bottleneck_w = input_res[1] // DOWNSAMPLE_FACTOR   # 4
    bottleneck_channels = 8
    latent_size = 32
    batch = 2
    D = bottleneck_h * bottleneck_w * bottleneck_channels  # 128

    key = jax.random.PRNGKey(0)
    kx, kw, kb = jax.random.split(key, 3)

    x = jax.random.normal(
        kx, (batch, bottleneck_channels, bottleneck_h, bottleneck_w), dtype=jnp.float32
    )

    # Deterministic parameter init (synthetic; matches nn.Linear / nn.BatchNorm1d shapes).
    bound = 1.0 / (D ** 0.5)
    w = jax.random.uniform(kw, (latent_size, D), minval=-bound, maxval=bound,
                           dtype=jnp.float32)
    b = jax.random.uniform(kb, (latent_size,), minval=-bound, maxval=bound,
                           dtype=jnp.float32)
    gamma = jnp.ones((latent_size,), dtype=jnp.float32)   # BN weight init
    beta = jnp.zeros((latent_size,), dtype=jnp.float32)   # BN bias init

    params = prepare_bottleneck_params(w, b, gamma, beta)   # one-time prep

    out = erfnet_bottleneck_forward(x, params)
    out = jax.block_until_ready(out)

    ref = _reference(x, w, b, gamma, beta)
    assert out.shape == (batch, latent_size)
    # Kernel drops the Linear bias (exactly cancelled by BN); fp rounding diff is ~1e-7.
    assert jnp.allclose(out, ref, atol=1e-4, rtol=1e-4), "mismatch vs JAX reference"

    print("KERNEL_OK")
</pallas_src>

<mosaic_0001>
module attributes {stable_mosaic.version = 11 : i64} {
  func.func @_bottleneck_kernel(%arg0: memref<2x128xf32, #tpu.memory_space<vmem>>, %arg1: memref<128x32xf32, #tpu.memory_space<vmem>>, %arg2: memref<1x32xf32, #tpu.memory_space<vmem>>, %arg3: memref<1x32xf32, #tpu.memory_space<vmem>>, %arg4: memref<2x32xf32, #tpu.memory_space<vmem>>) attributes {dimension_semantics = [], scalar_prefetch = 0 : i64, scratch_operands = 0 : i64, tpu.core_type = #tpu.core_type<tc>} {
    %c0 = arith.constant 0 : index
    %c0_0 = arith.constant 0 : index
    %0 = vector.load %arg0[%c0, %c0_0] : memref<2x128xf32, #tpu.memory_space<vmem>>, vector<2x128xf32>
    %c0_1 = arith.constant 0 : index
    %c0_2 = arith.constant 0 : index
    %1 = vector.load %arg1[%c0_1, %c0_2] : memref<128x32xf32, #tpu.memory_space<vmem>>, vector<128x32xf32>
    %cst = arith.constant dense<0.000000e+00> : vector<2x32xf32>
    %2 = tpu.matmul %0, %1, %cst {dimension_numbers = #tpu.dot_dimension_numbers<[1], [0], [0], [1], [0, 0, 1, 1], [], []>} : vector<2x128xf32>, vector<128x32xf32>, vector<2x32xf32> -> vector<2x32xf32>
    %cst_3 = arith.constant dense<0.000000e+00> : vector<32xf32>
    %3 = vector.multi_reduction <add>, %2, %cst_3 [0] : vector<2x32xf32> to vector<32xf32>
    %4 = vector.shape_cast %3 : vector<32xf32> to vector<1x32xf32>
    %cst_4 = arith.constant 2.000000e+00 : f32
    %5 = vector.broadcast %cst_4 : f32 to vector<1x32xf32>
    %6 = arith.divf %4, %5 : vector<1x32xf32>
    %7 = vector.broadcast %6 : vector<1x32xf32> to vector<2x32xf32>
    %8 = arith.subf %2, %7 : vector<2x32xf32>
    %9 = arith.mulf %8, %8 : vector<2x32xf32>
    %cst_5 = arith.constant dense<0.000000e+00> : vector<32xf32>
    %10 = vector.multi_reduction <add>, %9, %cst_5 [0] : vector<2x32xf32> to vector<32xf32>
    %11 = vector.shape_cast %10 : vector<32xf32> to vector<1x32xf32>
    %cst_6 = arith.constant 2.000000e+00 : f32
    %12 = vector.broadcast %cst_6 : f32 to vector<1x32xf32>
    %13 = arith.divf %11, %12 : vector<1x32xf32>
    %c0_7 = arith.constant 0 : index
    %c0_8 = arith.constant 0 : index
    %14 = vector.load %arg2[%c0_7, %c0_8] : memref<1x32xf32, #tpu.memory_space<vmem>>, vector<1x32xf32>
    %cst_9 = arith.constant 9.99999974E-6 : f32
    %15 = vector.broadcast %cst_9 : f32 to vector<1x32xf32>
    %16 = arith.addf %13, %15 : vector<1x32xf32>
    %17 = math.rsqrt %16 : vector<1x32xf32>
    %18 = arith.mulf %14, %17 : vector<1x32xf32>
    %19 = vector.broadcast %18 : vector<1x32xf32> to vector<2x32xf32>
    %20 = arith.mulf %8, %19 : vector<2x32xf32>
    %c0_10 = arith.constant 0 : index
    %c0_11 = arith.constant 0 : index
    %21 = vector.load %arg3[%c0_10, %c0_11] : memref<1x32xf32, #tpu.memory_space<vmem>>, vector<1x32xf32>
    %22 = vector.broadcast %21 : vector<1x32xf32> to vector<2x32xf32>
    %23 = arith.addf %20, %22 : vector<2x32xf32>
    %cst_12 = arith.constant 0.000000e+00 : f32
    %24 = vector.broadcast %cst_12 : f32 to vector<2x32xf32>
    %25 = arith.maximumf %23, %24 : vector<2x32xf32>
    %c0_13 = arith.constant 0 : index
    %c0_14 = arith.constant 0 : index
    %26 = vector.load %arg4[%c0_13, %c0_14] : memref<2x32xf32, #tpu.memory_space<vmem>>, vector<2x32xf32>
    tpu.vector_store %arg4[%c0_13, %c0_14], %25 {strides = array<i32>} : memref<2x32xf32, #tpu.memory_space<vmem>>, vector<2x32xf32>,
    return
  }
}

</mosaic_0001>

<bundles_post_ra>
// kernel: tpu_custom_call.1
= control target key start
LH: loop header
LB: loop body
LE: loop exit
PB: predicated region body
PF: predicated region fallthrough
CT: control target
= control target key end

     0   :  { %v267_v3 = vmov 0.0|0.0   ;;  %vm268_vm0 = vmmov 0   ;;  %v269_v6 = vmov 0.0   ;;  %s368_s0 = inlined_call_operand.vmem [shape: f32[2,128], index: 0, kind: input, shape index: {}]   ;;  %s369_s1 = inlined_call_operand.vmem [shape: f32[128,32], index: 1, kind: input, shape index: {}]   ;;  %s370_s2 = inlined_call_operand.vmem [shape: f32[1,32], index: 2, kind: input, shape index: {}]   ;;  %s371_s3 = inlined_call_operand.vmem [shape: f32[1,32], index: 3, kind: input, shape index: {}]   ;;  %s372_s4 = inlined_call_operand.hbm [shape: f32[2,32], index: 4, kind: output, shape index: {}]  }
   0x1   :  { %v19_v0 = vld [vmem:[%s369_s1] sm:$0xff]  ;;  %v20_v1 = vld [vmem:[%s369_s1 + $0x8] sm:$0xff]  ;;  %v21_v2 = vld [vmem:[%s369_s1 + $0x10] sm:$0xff]  ;;  %213 = vmatprep.subr.bf16.mxu0 %v267_v3  ;;  %210 = vmatprep.mubr.msk.f32.mxu0 %vm268_vm0, %v269_v6 }
   0x2   :  { %v214_v4 = vpack.c.bf16 %v20_v1, %v19_v0  ;;  %v22_v5 = vld [vmem:[%s369_s1 + $0x18] sm:$0xff]  ;;  %v23_v8 = vld [vmem:[%s369_s1 + $0x20] sm:$0xff]  ;;  %v24_v9 = vld [vmem:[%s369_s1 + $0x28] sm:$0xff] }
   0x3   :  { %v217_v7 = vpack.c.bf16 %v22_v5, %v21_v2 }
   0x4   :  { %215 = vmatpush3.bf16.msra.mxu0 %v214_v4 }
   0x5   :  { %216 = vmatprep.subr.bf16.mxu0 %v267_v3 }
   0x6   :  { %9 = vsyncpa [#allocation3], 0  ;;  %v220_v10 = vpack.c.bf16 %v24_v9, %v23_v8  ;;  %v25_v11 = vld [vmem:[%s369_s1 + $0x30] sm:$0xff]  ;;  %v26_v12 = vld [vmem:[%s369_s1 + $0x38] sm:$0xff]  ;;  %vm105_vm1 = vcmask 254976   ;;  %v130_v48 = vlaneseq  ;;  %s270_s25 = smov [#allocation2]  }
   0x7   :  { %v223_v13 = vpack.c.bf16 %v26_v12, %v25_v11  ;;  %v27_v14 = vld [vmem:[%s369_s1 + $0x40] sm:$0xff]  ;;  %v28_v15 = vld [vmem:[%s369_s1 + $0x48] sm:$0xff]  ;;  %v29_v17 = vld [vmem:[%s369_s1 + $0x50] sm:$0xff]  ;;  %s152_s26 = sshll.u32 %s270_s25, 4  ;;  %s153_s26 = int_to_ptr.vmem [resolvable:$true] %s152_s26 }
   0x8   :  { %218 = vmatpush3.bf16.msra.mxu0 %v217_v7  ;;  %v226_v16 = vpack.c.bf16 %v28_v15, %v27_v14  ;;  %v30_v18 = vld [vmem:[%s369_s1 + $0x58] sm:$0xff]  ;;  %v31_v20 = vld [vmem:[%s369_s1 + $0x60] sm:$0xff]  ;;  %v32_v21 = vld [vmem:[%s369_s1 + $0x68] sm:$0xff]  ;;  %v131_v49 = vshrl.u32 %v130_v48, 7  ;;  %s243_s27 = scalar_lea.vmem %s153_s26, 32  ;;  %p248_p1 = scmp.lt.s32.totalorder %s153_s26, %s153_s26 }
   0x9   :  { %219 = vmatprep.subr.bf16.mxu0 %v267_v3  ;;  %v229_v19 = vpack.c.bf16 %v30_v18, %v29_v17  ;;  %v232_v22 = vpack.c.bf16 %v32_v21, %v31_v20  ;;  %v33_v23 = vld [vmem:[%s369_s1 + $0x70] sm:$0xff]  ;;  %v34_v24 = vld [vmem:[%s369_s1 + $0x78] sm:$0xff]  ;;  %v18_v26 = vld [vmem:[%s368_s0] sm:$0x3]  ;;  %p244_p0 = scmp.ne.s32.totalorder %s153_s26, %s243_s27  ;;  %p249_p2 = scmp.lt.s32.totalorder %s243_s27, %s243_s27 }
   0xa   :  { %v235_v25 = vpack.c.bf16 %v34_v24, %v33_v23  ;;  %v125_v50 = vld [vmem:[%s370_s2] sm:$0x1]  ;;  %v132_v51 = vsub.s32 0, %v131_v49 }
   0xb   :  { %v160_v55 = vld [vmem:[%s371_s3] ss:$0 sm:$0xff]  ;;  %p250_p3 = por %p249_p2, %p248_p1 }
   0xc   :  { %221 = vmatpush3.bf16.msra.mxu0 %v220_v10 }
   0xd   :  { %222 = vmatprep.subr.bf16.mxu0 %v267_v3  ;;  %p251_p4 = pnand %p250_p3, %p244_p0 }
  0x10   :  { %224 = vmatpush3.bf16.msra.mxu0 %v223_v13 }
  0x11   :  { %225 = vmatprep.subr.bf16.mxu0 %v267_v3 }
  0x14   :  { %227 = vmatpush3.bf16.msra.mxu0 %v226_v16 }
  0x15   :  { %228 = vmatprep.subr.bf16.mxu0 %v267_v3 }
  0x18   :  { %230 = vmatpush3.bf16.msra.mxu0 %v229_v19 }
  0x19   :  { %231 = vmatprep.subr.bf16.mxu0 %v267_v3 }
  0x1c   :  { %233 = vmatpush3.bf16.msra.mxu0 %v232_v22 }
  0x1d   :  { %234 = vmatprep.subr.bf16.mxu0 %v267_v3 }
  0x20   :  { %236 = vmatpush3.bf16.msra.mxu0 %v235_v25 }
  0x23   :  { %211 = vmatmul.mubr.f32.vlgmr.msra.gmra.mrb[0].mxu0 %v18_v26 }
  0xf6   :  { %v101_v27 = vpop.f32.mrb[0].mxu0 }
  0xf7   :  { %v106_v28 = vsel %vm105_vm1, %v101_v27, 0.0  ;;  %v212_v29 = vpop.f32.mrb[1].mxu0 }
  0xf8   :  { %v107_v30 = vrot.slane %v106_v28, 4 }
  0xfa   :  { %v108_v31 = vadd.f32 %v107_v30, %v106_v28 }
  0xfc   :  { %v109_v32 = vrot.slane %v108_v31, 2 }
  0xfe   :  { %v110_v33 = vadd.f32 %v109_v32, %v108_v31 }
 0x100   :  { %v111_v34 = vrot.slane %v110_v33, 1 }
 0x102   :  { %v112_v35 = vadd.f32 %v111_v34, %v110_v33 }
 0x104   :  { %v114_v36 = vmul.f32 0.5, %v112_v35 }
 0x106   :  { %v115_v37 = vsub.f32 %v101_v27, %v114_v36 }
 0x108   :  { %v116_v38 = vmul.f32 %v115_v37, %v115_v37 }
 0x10a   :  { %v117_v39 = vsel %vm105_vm1, %v116_v38, 0.0 }
 0x10b   :  { %v118_v40 = vrot.slane %v117_v39, 4 }
 0x10d   :  { %v119_v41 = vadd.f32 %v118_v40, %v117_v39 }
 0x10f   :  { %v120_v42 = vrot.slane %v119_v41, 2 }
 0x111   :  { %v121_v43 = vadd.f32 %v120_v42, %v119_v41 }
 0x113   :  { %v122_v44 = vrot.slane %v121_v43, 1 }
 0x115   :  { %v123_v45 = vadd.f32 %v122_v44, %v121_v43 }
 0x117   :  { %v124_v46 = vmul.f32 0.5, %v123_v45 }
 0x119   :  { %v126_v47 = vadd.f32 1e-05, %v124_v46 }
 0x11b   :  { %241 = vrsqrt.f32 %v126_v47 }
 0x125   :  { %v242_v52 = vpop.eup %241 }
 0x126   :  { %v128_v53 = vmul.f32 %v242_v52, %v125_v50 }
 0x128   :  { %v133_v54 = vrot.slane %v128_v53, %v132_v51 }
 0x12a   :  { %v135_v56 = vmul.f32 %v133_v54, %v115_v37 }
 0x12c   :  { %v143_v57 = vadd.f32 %v160_v55, %v135_v56 }
 0x12e   :  { %v144_v58 = vmax.f32 %v143_v57, 0.0 }
 0x130   :  { %145 = vst.msk [vmem:[#allocation2] sm:$0x3] %vm105_vm1, %v144_v58 }
 0x131   :  { %254 = shalt.err (!%p251_p4)
}
 0x132   :  { %s255_s29 = scalar_lea.hbm %s372_s4, 32 }
 0x133   :  { %p256_p5 = scmp.ne.s32.totalorder %s372_s4, %s255_s29  ;;  %p259_p6 = scmp.lt.u32.totalorder %s255_s29, %s372_s4 }
 0x135   :  { %p261_p7 = pnand %p259_p6, %p256_p5 }
 0x137   :  { %264 = shalt.err (!%p261_p7)
}
 0x138   :  { %155 = dma.vmem_to_hbm [thread:$0]  %s153_s26, 32, %s372_s4, [#allocation3]  }
 0x139   :  { %265 = dma.done.wait [#allocation3], 32  }
 0x13a   :  { %266 = vsyncadd [#allocation3], 4294967264 }
 0x13b   :  { %159 = vsyncpa [#allocation3], 1 }

</bundles_post_ra>
